<compile_context>
chip_gen: v7x
topology: tpu7x:2x2x1
jax: 0.10.0
libtpu: 0.0.40
codegen_flags: <defaults>
</compile_context>

<pallas_src>
import functools

import jax
import jax.numpy as jnp
from jax.experimental import pallas as pl
from jax.experimental.pallas import tpu as pltpu


def _noise_injection_kernel(w_ref, img_ref, noise_ref, out_ref):
    """out = img + w * noise for one tile.

    w_ref:     SMEM (1,) float32 scalar weight
    img_ref:   VMEM (nb, rpn, THW) image tile
    noise_ref: VMEM (nb, 1,   THW) noise tile (one row per batch in the tile)
    out_ref:   VMEM (nb, rpn, THW)
    """
    w = w_ref[0]
    # Scale once per noise row (NOT once per channel after the broadcast).
    scaled = w * noise_ref[...].astype(jnp.float32)            # (nb, 1, THW)
    out = img_ref[...].astype(jnp.float32) + scaled            # broadcast over C
    out_ref[...] = out.astype(out_ref.dtype)


def _largest_divisor_leq(n, limit, step):
    """Largest multiple of `step` that divides n and is <= limit (or None)."""
    best = None
    for d in range(step, min(n, limit) + 1, step):
        if n % d == 0:
            best = d
    return best


def _choose_hw_tile(hw, itemsize, target_bytes):
    """Lane tile: full H*W if small enough, else a multiple-of-128 divisor."""
    max_cols = max(128, (target_bytes // 8) // itemsize)
    if hw <= max_cols:
        return hw
    return _largest_divisor_leq(hw, max_cols, 128) or hw


def _choose_row_tile(batch, ch, row_bytes, target_bytes):
    """Pick (nb, rpn): each image tile covers nb whole batches x rpn channels.

    Either nb == 1 and rpn divides C (tile stays inside one batch, rpn a
    multiple of 8 when possible -> sublane-dense), or rpn == C and nb divides
    B (tile spans whole batches -> big tiles even for tiny C). A tile never
    crosses a batch boundary, so its noise is exactly nb rows.
    """
    rows_total = batch * ch
    max_rows = max(1, target_bytes // max(1, row_bytes))
    if rows_total >= 16:
        # Keep >= 2 grid steps so both v7x TensorCores get work and the DMA
        # pipeline always has something to overlap.
        max_rows = min(max_rows, rows_total // 2)

    if ch > max_rows:
        # Tile channels within a single batch; prefer a multiple-of-8 chunk.
        rpn = (_largest_divisor_leq(ch, max_rows, 8)
               or _largest_divisor_leq(ch, max_rows, 1)
               or 1)
        return 1, rpn

    # Tile spans whole batches; prefer a sublane-dense (multiple-of-8) total
    # row count, otherwise the largest divisor of B that fits the budget.
    nb, nb_dense = 1, None
    for k in range(1, batch + 1):
        if batch % k != 0 or k * ch > max_rows:
            continue
        nb = k
        if (k * ch) % 8 == 0:
            nb_dense = k
    if nb_dense is not None:
        nb = nb_dense
    return nb, ch


def noise_injection(image, weight, noise=None, *, key=None,
                    target_tile_bytes=2 * 1024 * 1024):
    """image: (B, C, H, W); weight: shape (1,) or scalar; noise: (B, 1, H, W)."""
    batch, ch, height, width = image.shape
    if noise is None:
        if key is None:
            raise ValueError(
                "noise=None requires an explicit PRNG `key`: torch's .normal_() "
                "draws fresh noise every call, so silently reusing a fixed key "
                "would not match the reference semantics.")
        noise = jax.random.normal(key, (batch, 1, height, width),
                                  dtype=image.dtype)
        # TODO(synk): generate noise in-kernel (pltpu.prng_seed +
        # pltpu.stateful_normal, seeded per batch) to avoid the extra HBM
        # round-trip for the noise array.

    hw = height * width
    itemsize = jnp.dtype(image.dtype).itemsize

    thw = _choose_hw_tile(hw, itemsize, target_tile_bytes)
    nb, rpn = _choose_row_tile(batch, ch, thw * itemsize, target_tile_bytes)

    grid = (batch // nb, hw // thw, ch // rpn)   # channel axis innermost so the
    #                                              noise block is fetched once.

    img3 = image.reshape(batch, ch, hw)
    noise3 = noise.reshape(batch, 1, hw)
    # Keep the learned scalar in float32; round only once at the final store.
    w = jnp.asarray(weight, dtype=jnp.float32).reshape((1,))

    out3 = pl.pallas_call(
        _noise_injection_kernel,
        out_shape=jax.ShapeDtypeStruct((batch, ch, hw), image.dtype),
        grid_spec=pltpu.PrefetchScalarGridSpec(
            num_scalar_prefetch=0,
            grid=grid,
            in_specs=[
                pl.BlockSpec(memory_space=pltpu.MemorySpace.SMEM),          # weight
                pl.BlockSpec((nb, rpn, thw), lambda b, j, c: (b, c, j)),    # image
                pl.BlockSpec((nb, 1, thw), lambda b, j, c: (b, 0, j)),      # noise
            ],
            out_specs=pl.BlockSpec((nb, rpn, thw), lambda b, j, c: (b, c, j)),
        ),
        compiler_params=pltpu.CompilerParams(
            dimension_semantics=("parallel", "parallel", "parallel"),
        ),
    )(w, img3, noise3)

    return out3.reshape(batch, ch, height, width)


if __name__ == "__main__":
    key = jax.random.PRNGKey(0)
    k_img, k_noise = jax.random.split(key, 2)

    B, C, H, W = 2, 4, 16, 16
    image = jax.random.normal(k_img, (B, C, H, W), dtype=jnp.float32)
    noise = jax.random.normal(k_noise, (B, 1, H, W), dtype=jnp.float32)

    # nn.Parameter(torch.zeros(1)) init, plus a nonzero weight so the
    # scale + channel-broadcast path is actually exercised.
    weight_zero = jnp.zeros((1,), dtype=jnp.float32)
    weight_nz = jnp.array([0.5], dtype=jnp.float32)

    out0 = noise_injection(image, weight_zero, noise)
    out1 = noise_injection(image, weight_nz, noise)
    jax.block_until_ready((out0, out1))

    ref0 = image + weight_zero[0] * noise
    ref1 = image + weight_nz[0] * noise

    assert out0.shape == (B, C, H, W)
    assert jnp.allclose(out0, ref0, atol=1e-6, rtol=1e-6)
    assert jnp.allclose(out1, ref1, atol=1e-6, rtol=1e-6)

    print("KERNEL_OK")
</pallas_src>

<mosaic_0001>
module attributes {stable_mosaic.version = 11 : i64} {
  func.func @_noise_injection_kernel(%arg0: i32, %arg1: i32, %arg2: i32, %arg3: memref<1xf32, #tpu.memory_space<smem>>, %arg4: memref<2x4x256xf32, #tpu.memory_space<vmem>>, %arg5: memref<2x1x256xf32, #tpu.memory_space<vmem>>, %arg6: memref<2x4x256xf32, #tpu.memory_space<vmem>>) attributes {dimension_semantics = [#tpu.dimension_semantics<parallel>, #tpu.dimension_semantics<parallel>, #tpu.dimension_semantics<parallel>], iteration_bounds = array<i64: 1, 1, 1>, scalar_prefetch = 0 : i64, scratch_operands = 0 : i64, tpu.core_type = #tpu.core_type<tc>, window_params = [{transform_indices = @transform_0, window_bounds = array<i64: 1>}, {transform_indices = @transform_1, window_bounds = array<i64: 2, 4, 256>}, {transform_indices = @transform_2, window_bounds = array<i64: 2, 1, 256>}, {transform_indices = @transform_3, window_bounds = array<i64: 2, 4, 256>}]} {
    %c0 = arith.constant 0 : index
    %0 = memref.load %arg3[%c0] : memref<1xf32, #tpu.memory_space<smem>>
    %c0_0 = arith.constant 0 : index
    %c0_1 = arith.constant 0 : index
    %c0_2 = arith.constant 0 : index
    %1 = vector.load %arg5[%c0_0, %c0_1, %c0_2] : memref<2x1x256xf32, #tpu.memory_space<vmem>>, vector<2x1x256xf32>
    %2 = vector.broadcast %0 : f32 to vector<2x1x256xf32>
    %3 = arith.mulf %2, %1 : vector<2x1x256xf32>
    %c0_3 = arith.constant 0 : index
    %c0_4 = arith.constant 0 : index
    %c0_5 = arith.constant 0 : index
    %4 = vector.load %arg4[%c0_3, %c0_4, %c0_5] : memref<2x4x256xf32, #tpu.memory_space<vmem>>, vector<2x4x256xf32>
    %5 = vector.broadcast %3 : vector<2x1x256xf32> to vector<2x4x256xf32>
    %6 = arith.addf %4, %5 : vector<2x4x256xf32>
    %c0_6 = arith.constant 0 : index
    %c0_7 = arith.constant 0 : index
    %c0_8 = arith.constant 0 : index
    %7 = vector.load %arg6[%c0_6, %c0_7, %c0_8] : memref<2x4x256xf32, #tpu.memory_space<vmem>>, vector<2x4x256xf32>
    tpu.vector_store %arg6[%c0_6, %c0_7, %c0_8], %6 {strides = array<i32>} : memref<2x4x256xf32, #tpu.memory_space<vmem>>, vector<2x4x256xf32>,
    return
  }
  func.func @transform_0(%arg0: i32, %arg1: i32, %arg2: i32) -> i32 {
    %c0_i32 = arith.constant 0 : i32
    %c0_i32_0 = arith.constant 0 : i32
    return %c0_i32 : i32
  }
  func.func @transform_1(%arg0: i32, %arg1: i32, %arg2: i32) -> (i32, i32, i32) {
    %c0_i32 = arith.constant 0 : i32
    return %arg0, %arg2, %arg1 : i32, i32, i32
  }
  func.func @transform_2(%arg0: i32, %arg1: i32, %arg2: i32) -> (i32, i32, i32) {
    %c0_i32 = arith.constant 0 : i32
    %c0_i32_0 = arith.constant 0 : i32
    return %arg0, %c0_i32, %arg1 : i32, i32, i32
  }
  func.func @transform_3(%arg0: i32, %arg1: i32, %arg2: i32) -> (i32, i32, i32) {
    %c0_i32 = arith.constant 0 : i32
    return %arg0, %arg2, %arg1 : i32, i32, i32
  }
}

</mosaic_0001>

<bundles_post_ra>
// kernel: tpu_custom_call.1
= control target key start
LH: loop header
LB: loop body
LE: loop exit
PB: predicated region body
PF: predicated region fallthrough
CT: control target
= control target key end

     0   :  { %9 = vsyncpa [#allocation4], 0  ;;  %s196_s0 = inlined_call_operand.<no memory space> [shape: f32[1], index: 0, kind: input, shape index: {}]   ;;  %s197_s1 = inlined_call_operand.hbm [shape: f32[2,4,256], index: 1, kind: input, shape index: {}]   ;;  %s198_s2 = inlined_call_operand.vmem [shape: f32[2,1,256], index: 2, kind: input, shape index: {}]   ;;  %s199_s3 = inlined_call_operand.hbm [shape: f32[2,4,256], index: 3, kind: output, shape index: {}]  }
   0x1   :  { %10 = vsyncpa [#allocation5], 0  ;;  %s133_s12 = smov [#allocation3]   ;;  %s85_s16 = scalar_lea.hbm %s197_s1, 256 }
   0x2   :  { %s18_s13 = sshll.u32 %s133_s12, 4  ;;  %p86_p0 = scmp.ne.s32.totalorder %s197_s1, %s85_s16  ;;  %s19_s13 = int_to_ptr.vmem [resolvable:$true] %s18_s13 }
   0x3   :  { %p89_p1 = scmp.lt.u32.totalorder %s85_s16, %s197_s1 }
   0x5   :  { %p91_p2 = pnand %p89_p1, %p86_p0 }
   0x7   :  { %94 = shalt.err (!%p91_p2)
}
   0x8   :  { %s95_s21 = scalar_lea.vmem %s19_s13, 256  ;;  %p100_p4 = scmp.lt.s32.totalorder %s19_s13, %s19_s13 }
   0x9   :  { %p96_p3 = scmp.ne.s32.totalorder %s19_s13, %s95_s21  ;;  %p101_p5 = scmp.lt.s32.totalorder %s95_s21, %s95_s21 }
   0xb   :  { %p102_p6 = por %p101_p5, %p100_p4 }
   0xd   :  { %p103_p7 = pnand %p102_p6, %p96_p3 }
   0xf   :  { %106 = shalt.err (!%p103_p7)
}
  0x10   :  { %s134_s22 = smov 128   ;;  %s135_s23 = smov 8  }
  0x11   :  { %24 = dma.hbm_to_vmem [thread:$0]  %s197_s1, 256, %s19_s13, [#allocation4], %s134_s22, %s134_s22, %s135_s23  }
  0x12   :  { %129 = dma.done.wait [#allocation4], 256  }
  0x13   :  { %130 = vsyncadd [#allocation4], 4294967040  ;;  %v40_v0 = vlaneseq  ;;  %v33_v2 = vstv %s196_s0  ;;  %v31_v5 = vld [vmem:[%s198_s2] sm:$0x3]  ;;  %v32_v6 = vld [vmem:[%s198_s2 + $0x2] sm:$0x3] }
  0x14   :  { %v34_v7 = vmul.f32 %v33_v2, %v31_v5  ;;  %v35_v8 = vmul.f32 %v33_v2, %v32_v6  ;;  %v36_v13 = vld [vmem:[#allocation3] sm:$0xff]  ;;  %v37_v14 = vld [vmem:[#allocation3 + $0x8] sm:$0xff]  ;;  %s136_s1 = smov [#allocation6]  }
  0x15   :  { %v41_v1 = vshrl.u32 %v40_v0, 7  ;;  %s69_s0 = sshll.u32 %s136_s1, 4  ;;  %s70_s0 = int_to_ptr.vmem [resolvable:$true] %s69_s0 }
  0x16   :  { %s107_s5 = scalar_lea.vmem %s70_s0, 256  ;;  %p112_p9 = scmp.lt.s32.totalorder %s70_s0, %s70_s0 }
  0x17   :  { %v42_v3 = vsub.s32 0, %v41_v1  ;;  %v46_v4 = vsub.s32 1, %v41_v1  ;;  %p108_p8 = scmp.ne.s32.totalorder %s70_s0, %s107_s5  ;;  %p113_p10 = scmp.lt.s32.totalorder %s107_s5, %s107_s5 }
  0x19   :  { %v43_v9 = vrot.slane %v34_v7, %v42_v3  ;;  %v47_v10 = vrot.slane %v34_v7, %v46_v4  ;;  %v51_v11 = vrot.slane %v35_v8, %v42_v3  ;;  %v55_v12 = vrot.slane %v35_v8, %v46_v4  ;;  %p114_p11 = por %p113_p10, %p112_p9 }
  0x1b   :  { %v56_v15 = vcombine.low %v43_v9, %v47_v10  ;;  %v57_v16 = vcombine.low %v51_v11, %v55_v12  ;;  %p115_p12 = pnand %p114_p11, %p108_p8 }
  0x1d   :  { %v60_v17 = vadd.f32 %v56_v15, %v36_v13  ;;  %v61_v18 = vadd.f32 %v57_v16, %v37_v14 }
  0x1f   :  { %62 = vst [vmem:[#allocation6] sm:$0xff] %v60_v17  ;;  %63 = vst [vmem:[#allocation6 + $0x8] sm:$0xff] %v61_v18 }
  0x20   :  { %118 = shalt.err (!%p115_p12)
}
  0x21   :  { %s119_s7 = scalar_lea.hbm %s199_s3, 256 }
  0x22   :  { %p120_p13 = scmp.ne.s32.totalorder %s199_s3, %s119_s7  ;;  %p123_p0 = scmp.lt.u32.totalorder %s119_s7, %s199_s3 }
  0x24   :  { %p125_p1 = pnand %p123_p0, %p120_p13 }
  0x26   :  { %128 = shalt.err (!%p125_p1)
}
  0x27   :  { %75 = dma.vmem_to_hbm [thread:$0]  %s70_s0, 256, %s199_s3, [#allocation5], %s134_s22, %s134_s22, %s135_s23  }
  0x28   :  { %131 = dma.done.wait [#allocation5], 256  }
  0x29   :  { %132 = vsyncadd [#allocation5], 4294967040 }
  0x2a   :  { %79 = vsyncpa [#allocation4], 1 }
  0x2b   :  { %80 = vsyncpa [#allocation5], 1 }

</bundles_post_ra>
